<compile_context>
chip_gen: v5e
topology: v5e:2x2
jax: 0.10.0
libtpu: 0.0.40
codegen_flags: <defaults>
</compile_context>

<pallas_src>
from functools import partial

import jax
import jax.numpy as jnp
from jax.experimental import pallas as pl
from jax.experimental.pallas import tpu as pltpu

# Older jax releases named this TPUCompilerParams; prefer the current name.
_CompilerParams = getattr(pltpu, "CompilerParams", None) or getattr(
    pltpu, "TPUCompilerParams")


def _round_up(x, m):
    return (x + m - 1) // m * m


def _cdiv(a, b):
    return (a + b - 1) // b


def _vpu_has_bf16():
    """v6e / v7x VPUs have bf16 VALU; v5e and older do not."""
    try:
        kind = jax.devices()[0].device_kind.lower()
    except Exception:
        return False
    return ("v6" in kind) or ("v7" in kind)


def actor_critic_kernel(x_ref, w1_ref, b1_ref, w2_ref, b2_ref, wh_ref, bh_ref,
                        out_ref, *, epilogue_bf16):
    wdt = w1_ref.dtype
    x = x_ref[...].astype(wdt)

    # fc1 (+ bias, relu). MXU accumulates in f32; epilogue in bf16 only on
    # chips whose VPU supports it (v6e/v7x), otherwise f32.
    h1 = jnp.dot(x, w1_ref[...], preferred_element_type=jnp.float32)
    if epilogue_bf16:
        h1 = jnp.maximum(h1.astype(wdt) + b1_ref[...].astype(wdt), 0)
    else:
        h1 = jnp.maximum(h1 + b1_ref[...], 0.0).astype(wdt)

    # fc2 (+ bias, relu)
    h2 = jnp.dot(h1, w2_ref[...], preferred_element_type=jnp.float32)
    if epilogue_bf16:
        h2 = jnp.maximum(h2.astype(wdt) + b2_ref[...].astype(wdt), 0)
    else:
        h2 = jnp.maximum(h2 + b2_ref[...], 0.0).astype(wdt)

    # Fused actor||critic head -> one lane-dense [bb, 128] slab.
    out = jnp.dot(h2, wh_ref[...], preferred_element_type=jnp.float32) + bh_ref[...]
    out_ref[...] = out.astype(out_ref.dtype)


def _choose_tiling(B, block_b, min_rows_for_split=64):
    """Balanced tiles: derive bb from the tile count so padding waste is < 8
    rows per tile, and force >= 2 grid points for large-enough B so v7x's two
    TensorCores both get work."""
    num_tiles = max(_cdiv(B, block_b), 1)
    if B >= min_rows_for_split:
        num_tiles = max(num_tiles, 2)
    bb = _round_up(_cdiv(B, num_tiles), 8)
    return bb, num_tiles


def actor_critic_forward(state, packed_params, action_dim, *,
                         block_b=1024, out_dtype=None):
    """state: [B, state_dim] f32. Returns (logits [B, action_dim] f32,
    value [B, 1] f32).  With bf16 packed params (the default) the activations
    are quantized to bf16 between layers as well as the weights; accumulation
    is still f32."""
    w1, b1, w2, b2, wh, bh = packed_params
    B, state_dim = state.shape
    head_pad = wh.shape[1]
    wdt = w1.dtype
    if out_dtype is None:
        # bf16 output slab halves the dominant HBM writeback stream.
        out_dtype = jnp.bfloat16 if wdt == jnp.bfloat16 else jnp.float32

    bb, num_tiles = _choose_tiling(B, block_b)
    B_pad = bb * num_tiles
    if B_pad != B:
        state = jnp.pad(state, ((0, B_pad - B), (0, 0)))

    epilogue_bf16 = (wdt == jnp.bfloat16) and _vpu_has_bf16()
    kernel = partial(actor_critic_kernel, epilogue_bf16=epilogue_bf16)

    weight_bytes = sum(int(a.size) * a.dtype.itemsize
                       for a in (w1, b1, w2, b2, wh, bh))
    cost = pl.CostEstimate(
        flops=2 * B_pad * (state_dim * 256 + 256 * 128 + 128 * head_pad),
        transcendentals=0,
        bytes_accessed=(B_pad * state_dim * state.dtype.itemsize
                        + B_pad * head_pad * jnp.dtype(out_dtype).itemsize
                        + weight_bytes),
    )

    def _call(single_buffer_weights):
        def const_spec(shape):
            idx = lambda i: (0, 0)  # weights/biases resident across the grid
            if single_buffer_weights and hasattr(pl, "Buffered"):
                # Constant index_map -> nothing to prefetch; one buffer is enough.
                return pl.BlockSpec(shape, idx, pipeline_mode=pl.Buffered(1))
            return pl.BlockSpec(shape, idx)

        return pl.pallas_call(
            kernel,
            out_shape=jax.ShapeDtypeStruct((B_pad, head_pad), out_dtype),
            grid=(num_tiles,),
            in_specs=[
                pl.BlockSpec((bb, state_dim), lambda i: (i, 0)),
                const_spec(w1.shape), const_spec(b1.shape),
                const_spec(w2.shape), const_spec(b2.shape),
                const_spec(wh.shape), const_spec(bh.shape),
            ],
            out_specs=pl.BlockSpec((bb, head_pad), lambda i: (i, 0)),
            compiler_params=_CompilerParams(
                dimension_semantics=("parallel",),  # shard batch tiles across TCs
            ),
            cost_estimate=cost,
        )(state, w1, b1, w2, b2, wh, bh)

    try:
        out = _call(single_buffer_weights=True)
    except Exception:
        # pl.Buffered(1) not supported by this jax/libtpu combo: fall back to
        # default double-buffering (identical results, slightly more VMEM).
        out = _call(single_buffer_weights=False)

    logits = out[:B, :action_dim].astype(jnp.float32)
    value = out[:B, action_dim:action_dim + 1].astype(jnp.float32)
    return logits, value


def init_params(key, state_dim, action_dim):
    """PyTorch nn.Linear-style init (U[-1/sqrt(fan_in), 1/sqrt(fan_in)]).
    Weights stored as [in, out]; biases as [1, out]."""
    def linear(key, fan_in, fan_out):
        kw, kb = jax.random.split(key)
        bound = 1.0 / jnp.sqrt(fan_in)
        w = jax.random.uniform(kw, (fan_in, fan_out), jnp.float32, -bound, bound)
        b = jax.random.uniform(kb, (1, fan_out), jnp.float32, -bound, bound)
        return w, b

    k1, k2, k3, k4 = jax.random.split(key, 4)
    w1, b1 = linear(k1, state_dim, 256)
    w2, b2 = linear(k2, 256, 128)
    wa, ba = linear(k3, 128, action_dim)
    wc, bc = linear(k4, 128, 1)
    return (w1, b1, w2, b2, wa, ba, wc, bc)


def fuse_head_params(params, weight_dtype=jnp.bfloat16):
    """Pack actor||critic into one zero-padded, 128-lane-aligned head.
    Default bf16 weights (MXU-native everywhere, half the weight DMA);
    biases stay f32 (they are cast in-kernel only where the VPU has bf16)."""
    w1, b1, w2, b2, wa, ba, wc, bc = params
    hidden, action_dim = wa.shape
    head_pad = max(128, _round_up(action_dim + 1, 128))

    wh = jnp.zeros((hidden, head_pad), jnp.float32)
    wh = wh.at[:, :action_dim].set(wa)
    wh = wh.at[:, action_dim].set(wc[:, 0])
    bh = jnp.zeros((1, head_pad), jnp.float32)
    bh = bh.at[:, :action_dim].set(ba)
    bh = bh.at[:, action_dim].set(bc[:, 0])

    return (w1.astype(weight_dtype), b1.astype(jnp.float32),
            w2.astype(weight_dtype), b2.astype(jnp.float32),
            wh.astype(weight_dtype), bh.astype(jnp.float32))


def reference_forward(state, params):
    """Pure-JAX reference matching the PyTorch module semantics."""
    w1, b1, w2, b2, wa, ba, wc, bc = params
    h1 = jnp.maximum(state @ w1 + b1, 0.0)
    h2 = jnp.maximum(h1 @ w2 + b2, 0.0)
    return h2 @ wa + ba, h2 @ wc + bc


# TODO(synk): optim.Adam in the PyTorch module is training-only optimizer
# state, not part of the forward pass, so it is intentionally not translated.

if __name__ == "__main__":
    key = jax.random.PRNGKey(0)
    k_param, k_state = jax.random.split(key)

    batch = 8
    state_dim = 16
    action_dim = 8

    params = init_params(k_param, state_dim, action_dim)
    state = jax.random.normal(k_state, (batch, state_dim), jnp.float32)
    ref_logits, ref_value = reference_forward(state, params)

    # f32 weights/output path: structural correctness check.  Tolerance allows
    # for TPU default matmul precision (bf16 passes) differing between the
    # XLA reference and the Mosaic lowering.
    packed_f32 = fuse_head_params(params, jnp.float32)
    logits, value = actor_critic_forward(state, packed_f32, action_dim)
    jax.block_until_ready((logits, value))
    assert logits.shape == (batch, action_dim)
    assert value.shape == (batch, 1)
    assert jnp.allclose(logits, ref_logits, atol=2e-2, rtol=2e-2)
    assert jnp.allclose(value, ref_value, atol=2e-2, rtol=2e-2)

    # Default path: bf16 weights + bf16 output slab (activations quantized too).
    packed_bf16 = fuse_head_params(params)
    logits16, value16 = actor_critic_forward(state, packed_bf16, action_dim)
    jax.block_until_ready((logits16, value16))
    assert logits16.dtype == jnp.float32 and value16.dtype == jnp.float32
    assert jnp.allclose(logits16, ref_logits, atol=6e-2, rtol=6e-2)
    assert jnp.allclose(value16, ref_value, atol=6e-2, rtol=6e-2)

    # Ragged batch: exercises balanced tiling, >=2 grid points and padded rows.
    B2 = 137
    state2 = jax.random.normal(jax.random.PRNGKey(1), (B2, state_dim), jnp.float32)
    ref_l2, ref_v2 = reference_forward(state2, params)
    l2, v2 = actor_critic_forward(state2, packed_bf16, action_dim)
    jax.block_until_ready((l2, v2))
    assert l2.shape == (B2, action_dim) and v2.shape == (B2, 1)
    assert jnp.allclose(l2, ref_l2, atol=6e-2, rtol=6e-2)
    assert jnp.allclose(v2, ref_v2, atol=6e-2, rtol=6e-2)

    print("KERNEL_OK")
</pallas_src>

<mosaic_0001>
module attributes {stable_mosaic.version = 11 : i64} {
  func.func @actor_critic_kernel(%arg0: i32, %arg1: memref<8x16xf32, #tpu.memory_space<vmem>>, %arg2: memref<16x256xf32, #tpu.memory_space<vmem>>, %arg3: memref<1x256xf32, #tpu.memory_space<vmem>>, %arg4: memref<256x128xf32, #tpu.memory_space<vmem>>, %arg5: memref<1x128xf32, #tpu.memory_space<vmem>>, %arg6: memref<128x128xf32, #tpu.memory_space<vmem>>, %arg7: memref<1x128xf32, #tpu.memory_space<vmem>>, %arg8: memref<8x128xf32, #tpu.memory_space<vmem>>) attributes {dimension_semantics = [#tpu.dimension_semantics<parallel>], iteration_bounds = array<i64: 1>, scalar_prefetch = 0 : i64, scratch_operands = 0 : i64, tpu.core_type = #tpu.core_type<tc>, window_params = [{transform_indices = @transform_0, window_bounds = array<i64: 8, 16>}, {pipeline_mode = #tpu.pipeline_mode<synchronous>, transform_indices = @transform_1, window_bounds = array<i64: 16, 256>}, {pipeline_mode = #tpu.pipeline_mode<synchronous>, transform_indices = @transform_2, window_bounds = array<i64: 1, 256>}, {pipeline_mode = #tpu.pipeline_mode<synchronous>, transform_indices = @transform_3, window_bounds = array<i64: 256, 128>}, {pipeline_mode = #tpu.pipeline_mode<synchronous>, transform_indices = @transform_4, window_bounds = array<i64: 1, 128>}, {pipeline_mode = #tpu.pipeline_mode<synchronous>, transform_indices = @transform_5, window_bounds = array<i64: 128, 128>}, {pipeline_mode = #tpu.pipeline_mode<synchronous>, transform_indices = @transform_6, window_bounds = array<i64: 1, 128>}, {transform_indices = @transform_7, window_bounds = array<i64: 8, 128>}]} {
    %c0 = arith.constant 0 : index
    %c0_0 = arith.constant 0 : index
    %0 = vector.load %arg1[%c0, %c0_0] : memref<8x16xf32, #tpu.memory_space<vmem>>, vector<8x16xf32>
    %c0_1 = arith.constant 0 : index
    %c0_2 = arith.constant 0 : index
    %1 = vector.load %arg2[%c0_1, %c0_2] : memref<16x256xf32, #tpu.memory_space<vmem>>, vector<16x256xf32>
    %cst = arith.constant dense<0.000000e+00> : vector<8x256xf32>
    %2 = tpu.matmul %0, %1, %cst {dimension_numbers = #tpu.dot_dimension_numbers<[1], [0], [0], [1], [0, 0, 1, 1], [], []>} : vector<8x16xf32>, vector<16x256xf32>, vector<8x256xf32> -> vector<8x256xf32>
    %c0_3 = arith.constant 0 : index
    %c0_4 = arith.constant 0 : index
    %3 = vector.load %arg3[%c0_3, %c0_4] : memref<1x256xf32, #tpu.memory_space<vmem>>, vector<1x256xf32>
    %4 = vector.broadcast %3 : vector<1x256xf32> to vector<8x256xf32>
    %5 = arith.addf %2, %4 : vector<8x256xf32>
    %cst_5 = arith.constant 0.000000e+00 : f32
    %6 = vector.broadcast %cst_5 : f32 to vector<8x256xf32>
    %7 = arith.maximumf %5, %6 : vector<8x256xf32>
    %c0_6 = arith.constant 0 : index
    %c0_7 = arith.constant 0 : index
    %8 = vector.load %arg4[%c0_6, %c0_7] : memref<256x128xf32, #tpu.memory_space<vmem>>, vector<256x128xf32>
    %cst_8 = arith.constant dense<0.000000e+00> : vector<8x128xf32>
    %9 = tpu.matmul %7, %8, %cst_8 {dimension_numbers = #tpu.dot_dimension_numbers<[1], [0], [0], [1], [0, 0, 1, 1], [], []>} : vector<8x256xf32>, vector<256x128xf32>, vector<8x128xf32> -> vector<8x128xf32>
    %c0_9 = arith.constant 0 : index
    %c0_10 = arith.constant 0 : index
    %10 = vector.load %arg5[%c0_9, %c0_10] : memref<1x128xf32, #tpu.memory_space<vmem>>, vector<1x128xf32>
    %11 = vector.broadcast %10 : vector<1x128xf32> to vector<8x128xf32>
    %12 = arith.addf %9, %11 : vector<8x128xf32>
    %cst_11 = arith.constant 0.000000e+00 : f32
    %13 = vector.broadcast %cst_11 : f32 to vector<8x128xf32>
    %14 = arith.maximumf %12, %13 : vector<8x128xf32>
    %c0_12 = arith.constant 0 : index
    %c0_13 = arith.constant 0 : index
    %15 = vector.load %arg6[%c0_12, %c0_13] : memref<128x128xf32, #tpu.memory_space<vmem>>, vector<128x128xf32>
    %cst_14 = arith.constant dense<0.000000e+00> : vector<8x128xf32>
    %16 = tpu.matmul %14, %15, %cst_14 {dimension_numbers = #tpu.dot_dimension_numbers<[1], [0], [0], [1], [0, 0, 1, 1], [], []>} : vector<8x128xf32>, vector<128x128xf32>, vector<8x128xf32> -> vector<8x128xf32>
    %c0_15 = arith.constant 0 : index
    %c0_16 = arith.constant 0 : index
    %17 = vector.load %arg7[%c0_15, %c0_16] : memref<1x128xf32, #tpu.memory_space<vmem>>, vector<1x128xf32>
    %18 = vector.broadcast %17 : vector<1x128xf32> to vector<8x128xf32>
    %19 = arith.addf %16, %18 : vector<8x128xf32>
    %c0_17 = arith.constant 0 : index
    %c0_18 = arith.constant 0 : index
    %20 = vector.load %arg8[%c0_17, %c0_18] : memref<8x128xf32, #tpu.memory_space<vmem>>, vector<8x128xf32>
    tpu.vector_store %arg8[%c0_17, %c0_18], %19 {strides = array<i32>} : memref<8x128xf32, #tpu.memory_space<vmem>>, vector<8x128xf32>,
    return
  }
  func.func @transform_0(%arg0: i32) -> (i32, i32) {
    %c0_i32 = arith.constant 0 : i32
    %c0_i32_0 = arith.constant 0 : i32
    return %arg0, %c0_i32 : i32, i32
  }
  func.func @transform_1(%arg0: i32) -> (i32, i32) {
    %c0_i32 = arith.constant 0 : i32
    %c0_i32_0 = arith.constant 0 : i32
    %c0_i32_1 = arith.constant 0 : i32
    return %c0_i32, %c0_i32_0 : i32, i32
  }
  func.func @transform_2(%arg0: i32) -> (i32, i32) {
    %c0_i32 = arith.constant 0 : i32
    %c0_i32_0 = arith.constant 0 : i32
    %c0_i32_1 = arith.constant 0 : i32
    return %c0_i32, %c0_i32_0 : i32, i32
  }
  func.func @transform_3(%arg0: i32) -> (i32, i32) {
    %c0_i32 = arith.constant 0 : i32
    %c0_i32_0 = arith.constant 0 : i32
    %c0_i32_1 = arith.constant 0 : i32
    return %c0_i32, %c0_i32_0 : i32, i32
  }
  func.func @transform_4(%arg0: i32) -> (i32, i32) {
    %c0_i32 = arith.constant 0 : i32
    %c0_i32_0 = arith.constant 0 : i32
    %c0_i32_1 = arith.constant 0 : i32
    return %c0_i32, %c0_i32_0 : i32, i32
  }
  func.func @transform_5(%arg0: i32) -> (i32, i32) {
    %c0_i32 = arith.constant 0 : i32
    %c0_i32_0 = arith.constant 0 : i32
    %c0_i32_1 = arith.constant 0 : i32
    return %c0_i32, %c0_i32_0 : i32, i32
  }
  func.func @transform_6(%arg0: i32) -> (i32, i32) {
    %c0_i32 = arith.constant 0 : i32
    %c0_i32_0 = arith.constant 0 : i32
    %c0_i32_1 = arith.constant 0 : i32
    return %c0_i32, %c0_i32_0 : i32, i32
  }
  func.func @transform_7(%arg0: i32) -> (i32, i32) {
    %c0_i32 = arith.constant 0 : i32
    %c0_i32_0 = arith.constant 0 : i32
    return %arg0, %c0_i32 : i32, i32
  }
}

module attributes {stable_mosaic.version = 11 : i64} {
  func.func @actor_critic_kernel(%arg0: i32, %arg1: memref<8x16xf32, #tpu.memory_space<vmem>>, %arg2: memref<16x256xf32, #tpu.memory_space<vmem>>, %arg3: memref<1x256xf32, #tpu.memory_space<vmem>>, %arg4: memref<256x128xf32, #tpu.memory_space<vmem>>, %arg5: memref<1x128xf32, #tpu.memory_space<vmem>>, %arg6: memref<128x128xf32, #tpu.memory_space<vmem>>, %arg7: memref<1x128xf32, #tpu.memory_space<vmem>>, %arg8: memref<8x128xf32, #tpu.memory_space<vmem>>) attributes {dimension_semantics = [#tpu.dimension_semantics<parallel>], iteration_bounds = array<i64: 1>, scalar_prefetch = 0 : i64, scratch_operands = 0 : i64, tpu.core_type = #tpu.core_type<tc>, window_params = [{transform_indices = @transform_0, window_bounds = array<i64: 8, 16>}, {pipeline_mode = #tpu.pipeline_mode<synchronous>, transform_indices = @transform_1, window_bounds = array<i64: 16, 256>}, {pipeline_mode = #tpu.pipeline_mode<synchronous>, transform_indices = @transform_2, window_bounds = array<i64: 1, 256>}, {pipeline_mode = #tpu.pipeline_mode<synchronous>, transform_indices = @transform_3, window_bounds = array<i64: 256, 128>}, {pipeline_mode = #tpu.pipeline_mode<synchronous>, transform_indices = @transform_4, window_bounds = array<i64: 1, 128>}, {pipeline_mode = #tpu.pipeline_mode<synchronous>, transform_indices = @transform_5, window_bounds = array<i64: 128, 128>}, {pipeline_mode = #tpu.pipeline_mode<synchronous>, transform_indices = @transform_6, window_bounds = array<i64: 1, 128>}, {transform_indices = @transform_7, window_bounds = array<i64: 8, 128>}]} {
    %c0 = arith.constant 0 : index
    %c0_0 = arith.constant 0 : index
    %0 = vector.load %arg1[%c0, %c0_0] : memref<8x16xf32, #tpu.memory_space<vmem>>, vector<8x16xf32>
    %c0_1 = arith.constant 0 : index
    %c0_2 = arith.constant 0 : index
    %1 = vector.load %arg2[%c0_1, %c0_2] : memref<16x256xf32, #tpu.memory_space<vmem>>, vector<16x256xf32>
    %cst = arith.constant dense<0.000000e+00> : vector<8x256xf32>
    %2 = tpu.matmul %0, %1, %cst {dimension_numbers = #tpu.dot_dimension_numbers<[1], [0], [0], [1], [0, 0, 1, 1], [], []>} : vector<8x16xf32>, vector<16x256xf32>, vector<8x256xf32> -> vector<8x256xf32>
    %c0_3 = arith.constant 0 : index
    %c0_4 = arith.constant 0 : index
    %3 = vector.load %arg3[%c0_3, %c0_4] : memref<1x256xf32, #tpu.memory_space<vmem>>, vector<1x256xf32>
    %4 = vector.broadcast %3 : vector<1x256xf32> to vector<8x256xf32>
    %5 = arith.addf %2, %4 : vector<8x256xf32>
    %cst_5 = arith.constant 0.000000e+00 : f32
    %6 = vector.broadcast %cst_5 : f32 to vector<8x256xf32>
    %7 = arith.maximumf %5, %6 : vector<8x256xf32>
    %c0_6 = arith.constant 0 : index
    %c0_7 = arith.constant 0 : index
    %8 = vector.load %arg4[%c0_6, %c0_7] : memref<256x128xf32, #tpu.memory_space<vmem>>, vector<256x128xf32>
    %cst_8 = arith.constant dense<0.000000e+00> : vector<8x128xf32>
    %9 = tpu.matmul %7, %8, %cst_8 {dimension_numbers = #tpu.dot_dimension_numbers<[1], [0], [0], [1], [0, 0, 1, 1], [], []>} : vector<8x256xf32>, vector<256x128xf32>, vector<8x128xf32> -> vector<8x128xf32>
    %c0_9 = arith.constant 0 : index
    %c0_10 = arith.constant 0 : index
    %10 = vector.load %arg5[%c0_9, %c0_10] : memref<1x128xf32, #tpu.memory_space<vmem>>, vector<1x128xf32>
    %11 = vector.broadcast %10 : vector<1x128xf32> to vector<8x128xf32>
    %12 = arith.addf %9, %11 : vector<8x128xf32>
    %cst_11 = arith.constant 0.000000e+00 : f32
    %13 = vector.broadcast %cst_11 : f32 to vector<8x128xf32>
    %14 = arith.maximumf %12, %13 : vector<8x128xf32>
    %c0_12 = arith.constant 0 : index
    %c0_13 = arith.constant 0 : index
    %15 = vector.load %arg6[%c0_12, %c0_13] : memref<128x128xf32, #tpu.memory_space<vmem>>, vector<128x128xf32>
    %cst_14 = arith.constant dense<0.000000e+00> : vector<8x128xf32>
    %16 = tpu.matmul %14, %15, %cst_14 {dimension_numbers = #tpu.dot_dimension_numbers<[1], [0], [0], [1], [0, 0, 1, 1], [], []>} : vector<8x128xf32>, vector<128x128xf32>, vector<8x128xf32> -> vector<8x128xf32>
    %c0_15 = arith.constant 0 : index
    %c0_16 = arith.constant 0 : index
    %17 = vector.load %arg7[%c0_15, %c0_16] : memref<1x128xf32, #tpu.memory_space<vmem>>, vector<1x128xf32>
    %18 = vector.broadcast %17 : vector<1x128xf32> to vector<8x128xf32>
    %19 = arith.addf %16, %18 : vector<8x128xf32>
    %c0_17 = arith.constant 0 : index
    %c0_18 = arith.constant 0 : index
    %20 = vector.load %arg8[%c0_17, %c0_18] : memref<8x128xf32, #tpu.memory_space<vmem>>, vector<8x128xf32>
    tpu.vector_store %arg8[%c0_17, %c0_18], %19 {strides = array<i32>} : memref<8x128xf32, #tpu.memory_space<vmem>>, vector<8x128xf32>,
    return
  }
  func.func @transform_0(%arg0: i32) -> (i32, i32) {
    %c0_i32 = arith.constant 0 : i32
    %c0_i32_0 = arith.constant 0 : i32
    return %arg0, %c0_i32 : i32, i32
  }
  func.func @transform_1(%arg0: i32) -> (i32, i32) {
    %c0_i32 = arith.constant 0 : i32
    %c0_i32_0 = arith.constant 0 : i32
    %c0_i32_1 = arith.constant 0 : i32
    return %c0_i32, %c0_i32_0 : i32, i32
  }
  func.func @transform_2(%arg0: i32) -> (i32, i32) {
    %c0_i32 = arith.constant 0 : i32
    %c0_i32_0 = arith.constant 0 : i32
    %c0_i32_1 = arith.constant 0 : i32
    return %c0_i32, %c0_i32_0 : i32, i32
  }
  func.func @transform_3(%arg0: i32) -> (i32, i32) {
    %c0_i32 = arith.constant 0 : i32
    %c0_i32_0 = arith.constant 0 : i32
    %c0_i32_1 = arith.constant 0 : i32
    return %c0_i32, %c0_i32_0 : i32, i32
  }
  func.func @transform_4(%arg0: i32) -> (i32, i32) {
    %c0_i32 = arith.constant 0 : i32
    %c0_i32_0 = arith.constant 0 : i32
    %c0_i32_1 = arith.constant 0 : i32
    return %c0_i32, %c0_i32_0 : i32, i32
  }
  func.func @transform_5(%arg0: i32) -> (i32, i32) {
    %c0_i32 = arith.constant 0 : i32
    %c0_i32_0 = arith.constant 0 : i32
    %c0_i32_1 = arith.constant 0 : i32
    return %c0_i32, %c0_i32_0 : i32, i32
  }
  func.func @transform_6(%arg0: i32) -> (i32, i32) {
    %c0_i32 = arith.constant 0 : i32
    %c0_i32_0 = arith.constant 0 : i32
    %c0_i32_1 = arith.constant 0 : i32
    return %c0_i32, %c0_i32_0 : i32, i32
  }
  func.func @transform_7(%arg0: i32) -> (i32, i32) {
    %c0_i32 = arith.constant 0 : i32
    %c0_i32_0 = arith.constant 0 : i32
    return %arg0, %c0_i32 : i32, i32
  }
}

</mosaic_0001>

<bundles_post_ra>
// kernel: tpu_custom_call.1
= control target key start
LH: loop header
LB: loop body
LE: loop exit
PB: predicated region body
PF: predicated region fallthrough
CT: control target
= control target key end

     0   :  { %12 = vsyncpa [#allocation3], 0  ;;  %s537_s0 = inlined_call_operand.hbm [shape: f32[8,16], index: 0, kind: input, shape index: {}]   ;;  %s538_s1 = inlined_call_operand.hbm [shape: f32[16,256], index: 1, kind: input, shape index: {}]   ;;  %s539_s2 = inlined_call_operand.hbm [shape: f32[1,256], index: 2, kind: input, shape index: {}]   ;;  %s540_s3 = inlined_call_operand.hbm [shape: f32[256,128], index: 3, kind: input, shape index: {}]   ;;  %s541_s4 = inlined_call_operand.vmem [shape: f32[1,128], index: 4, kind: input, shape index: {}]   ;;  %s542_s5 = inlined_call_operand.hbm [shape: f32[128,128], index: 5, kind: input, shape index: {}]   ;;  %s543_s6 = inlined_call_operand.vmem [shape: f32[1,128], index: 6, kind: input, shape index: {}]   ;;  %s544_s7 = inlined_call_operand.hbm [shape: f32[8,128], index: 7, kind: output, shape index: {}]  }
   0x1   :  { %13 = vsyncpa [#allocation6], 0 }
   0x2   :  { %14 = vsyncpa [#allocation9], 0  ;;  %s31_s26 = sshll.u32 %s538_s1, 4  ;;  %s32_s26 = int_to_ptr.hbm [resolvable:$true] %s31_s26 }
   0x3   :  { %15 = vsyncpa [#allocation4], 0  ;;  %s461_s27 = smov [#allocation5]   ;;  %s55_s8 = sshll.u32 %s540_s3, 4  ;;  %s56_s8 = int_to_ptr.hbm [resolvable:$true] %s55_s8 }
   0x4   :  { %s33_s28 = sshll.u32 %s461_s27, 4  ;;  %s462_s9 = smov 256   ;;  %s34_s28 = int_to_ptr.vmem [resolvable:$true] %s33_s28 }
   0x5   :  { %s463_s10 = smov 16   ;;  %s464_s11 = smov [#allocation8]  }
   0x6   :  { %39 = dma.hbm_to_vmem [thread:$0]  %s32_s26, 512, %s34_s28, [#allocation6], %s462_s9, %s462_s9, %s463_s10  }
   0x7   :  { %s57_s12 = sshll.u32 %s464_s11, 4  ;;  %s465_s13 = smov 128   ;;  %s58_s12 = int_to_ptr.vmem [resolvable:$true] %s57_s12 }
   0x8   :  { %s466_s14 = smov 8   ;;  %s21_s16 = sshll.u32 %s537_s0, 4  ;;  %s22_s16 = int_to_ptr.hbm [resolvable:$true] %s21_s16 }
   0x9   :  { %63 = dma.hbm_to_vmem [thread:$0]  %s56_s8, 4096, %s58_s12, [#allocation9], %s465_s13, %s465_s13, %s466_s14  }
   0xa   :  { %s467_s17 = smov [#allocation2]   ;;  %s45_s20 = sshll.u32 %s539_s2, 4  ;;  %s46_s20 = int_to_ptr.hbm [resolvable:$true] %s45_s20 }
   0xb   :  { %s23_s18 = sshll.u32 %s467_s17, 4  ;;  %s468_s21 = smov [#allocation7]   ;;  %s24_s18 = int_to_ptr.vmem [resolvable:$true] %s23_s18 }
   0xc   :  { %26 = dma.hbm_to_vmem [thread:$0]  %s22_s16, 128, %s24_s18, [#allocation3]  }
   0xd   :  { %s47_s22 = sshll.u32 %s468_s21, 4  ;;  %s70_s25 = sshll.u32 %s542_s5, 4  ;;  %s48_s22 = int_to_ptr.vmem [resolvable:$true] %s47_s22  ;;  %s71_s25 = int_to_ptr.hbm [resolvable:$true] %s70_s25 }
   0xe   :  { %50 = dma.hbm_to_vmem [thread:$0]  %s46_s20, 32, %s48_s22, [#allocation6]  }
   0xf   :  { %s469_s0 = smov [#allocation10]  }
  0x10   :  { %s72_s26 = sshll.u32 %s469_s0, 4  ;;  %s73_s26 = int_to_ptr.vmem [resolvable:$true] %s72_s26 }
  0x11   :  { %78 = dma.hbm_to_vmem [thread:$0]  %s71_s25, 2048, %s73_s26, [#allocation9], %s465_s13, %s465_s13, %s466_s14  }
  0x12   :  { %453 = dma.done.wait [#allocation3], 128  }
  0x13   :  { %454 = vsyncadd [#allocation3], 4294967168 }
  0x14   :  { %455 = dma.done.wait [#allocation6], 544  }
  0x15   :  { %456 = vsyncadd [#allocation6], 4294966752 }
  0x16   :  { %457 = dma.done.wait [#allocation9], 6144  }
  0x17   :  { %458 = vsyncadd [#allocation9], 4294961152  ;;  %v104_v0 = vld [vmem:[#allocation5 + $0x10] sm:$0xff]  ;;  %v102_v1 = vld [vmem:[#allocation5] sm:$0xff]  ;;  %vm112_vm0 = vcmask 130048   ;;  %s470_s29 = smov [#allocation11]  }
  0x18   :  { %130 = vmatpush.msra.mxu1 %v104_v0  ;;  %v101_v2 = vld [vmem:[#allocation2] sm:$0xff]  ;;  %v171_v6 = vld [vmem:[#allocation8 + $0x68] sm:$0xff]  ;;  %v170_v10 = vld [vmem:[#allocation8 + $0x60] sm:$0xff]  ;;  %s281_s30 = sshll.u32 %s470_s29, 4  ;;  %s283_s10 = sshll.u32 %s544_s7, 4  ;;  %s282_s30 = int_to_ptr.vmem [resolvable:$true] %s281_s30  ;;  %s284_s10 = int_to_ptr.hbm [resolvable:$true] %s283_s10 }
  0x19   :  { %v173_v3 = vld [vmem:[#allocation8 + $0x78] sm:$0xff]  ;;  %v172_v5 = vld [vmem:[#allocation8 + $0x70] sm:$0xff]  ;;  %v103_v8 = vld [vmem:[#allocation5 + $0x8] sm:$0xff] }
  0x1a   :  { %v105_v4 = vld [vmem:[#allocation5 + $0x18] sm:$0xff]  ;;  %194 = vmatpush.msra.mxu2 %v173_v3  ;;  %131 = vmatpush.msra.mxu1 %v102_v1  ;;  %v187_v11 = vld [vmem:[#allocation8 + $0xe8] sm:$0xff]  ;;  %v186_v13 = vld [vmem:[#allocation8 + $0xe0] sm:$0xff] }
  0x1b   :  { %v189_v7 = vld [vmem:[#allocation8 + $0xf8] sm:$0xff]  ;;  %295 = vmatmul.msk.f32.vlgmr.msra.gmra.mxu1 %vm112_vm0, %v101_v2  ;;  %v188_v9 = vld [vmem:[#allocation8 + $0xf0] sm:$0xff]  ;;  %v167_v16 = vld [vmem:[#allocation8 + $0x48] sm:$0xff] }
  0x1c   :  { %195 = vmatpush.msra.mxu2 %v172_v5  ;;  %150 = vmatpush.msrb.mxu1 %v105_v4  ;;  %v169_v12 = vld [vmem:[#allocation8 + $0x58] sm:$0xff]  ;;  %v168_v14 = vld [vmem:[#allocation8 + $0x50] sm:$0xff]  ;;  %v166_v18 = vld [vmem:[#allocation8 + $0x40] sm:$0xff] }
  0x1d   :  { %214 = vmatpush.msra.mxu3 %v189_v7  ;;  %v185_v15 = vld [vmem:[#allocation8 + $0xd8] sm:$0xff]  ;;  %v184_v17 = vld [vmem:[#allocation8 + $0xd0] sm:$0xff]  ;;  %v183_v19 = vld [vmem:[#allocation8 + $0xc8] sm:$0xff] }
  0x1e   :  { %196 = vmatpush.msra.mxu2 %v171_v6  ;;  %151 = vmatpush.msrb.mxu1 %v103_v8  ;;  %v165_v20 = vld [vmem:[#allocation8 + $0x38] sm:$0xff]  ;;  %v182_v21 = vld [vmem:[#allocation8 + $0xc0] sm:$0xff]  ;;  %v164_v22 = vld [vmem:[#allocation8 + $0x30] sm:$0xff] }
  0x1f   :  { %215 = vmatpush.msra.mxu3 %v188_v9  ;;  %v181_v23 = vld [vmem:[#allocation8 + $0xb8] sm:$0xff]  ;;  %v163_v24 = vld [vmem:[#allocation8 + $0x28] sm:$0xff]  ;;  %v162_v25 = vld [vmem:[#allocation8 + $0x20] sm:$0xff] }
  0x20   :  { %197 = vmatpush.msra.mxu2 %v170_v10  ;;  %v161_v26 = vld [vmem:[#allocation8 + $0x18] sm:$0xff]  ;;  %v160_v27 = vld [vmem:[#allocation8 + $0x10] sm:$0xff]  ;;  %v159_v29 = vld [vmem:[#allocation8 + $0x8] sm:$0xff] }
  0x21   :  { %216 = vmatpush.msra.mxu3 %v187_v11  ;;  %v180_v28 = vld [vmem:[#allocation8 + $0xb0] sm:$0xff]  ;;  %v179_v30 = vld [vmem:[#allocation8 + $0xa8] sm:$0xff]  ;;  %v158_v31 = vld [vmem:[#allocation8] sm:$0xff] }
  0x22   :  { %198 = vmatpush.msra.mxu2 %v169_v12  ;;  %v178_v32 = vld [vmem:[#allocation8 + $0xa0] sm:$0xff]  ;;  %v177_v33 = vld [vmem:[#allocation8 + $0x98] sm:$0xff]  ;;  %v176_v34 = vld [vmem:[#allocation8 + $0x90] sm:$0xff] }
  0x23   :  { %217 = vmatpush.msra.mxu3 %v186_v13  ;;  %296 = vmatmul.msk.f32.vlgmr.msrb.gmra.mxu1 %vm112_vm0, %v101_v2  ;;  %v175_v35 = vld [vmem:[#allocation8 + $0x88] sm:$0xff]  ;;  %v174_v36 = vld [vmem:[#allocation8 + $0x80] sm:$0xff]  ;;  %v250_v37 = vld [vmem:[#allocation10 + $0x78] sm:$0xff] }
  0x24   :  { %199 = vmatpush.msra.mxu2 %v168_v14  ;;  %v249_v38 = vld [vmem:[#allocation10 + $0x70] sm:$0xff]  ;;  %255 = vmatpush.msra.mxu0 %v250_v37  ;;  %v248_v39 = vld [vmem:[#allocation10 + $0x68] sm:$0xff]  ;;  %v247_v40 = vld [vmem:[#allocation10 + $0x60] sm:$0xff] }
  0x25   :  { %218 = vmatpush.msra.mxu3 %v185_v15  ;;  %v246_v41 = vld [vmem:[#allocation10 + $0x58] sm:$0xff]  ;;  %v245_v42 = vld [vmem:[#allocation10 + $0x50] sm:$0xff]  ;;  %v244_v43 = vld [vmem:[#allocation10 + $0x48] sm:$0xff] }
  0x26   :  { %200 = vmatpush.msra.mxu2 %v167_v16  ;;  %256 = vmatpush.msra.mxu0 %v249_v38  ;;  %v243_v44 = vld [vmem:[#allocation10 + $0x40] sm:$0xff]  ;;  %v106_v45 = vld [vmem:[#allocation7] sm:$0x3]  ;;  %v241_v55 = vld [vmem:[#allocation10 + $0x30] sm:$0xff] }
  0x27   :  { %219 = vmatpush.msra.mxu3 %v184_v17  ;;  %v242_v46 = vld [vmem:[#allocation10 + $0x38] sm:$0xff]  ;;  %v108_v47 = vperm.slane %v106_v45, 0  ;;  %v109_v51 = vperm.slane %v106_v45, 1  ;;  %v240_v56 = vld [vmem:[#allocation10 + $0x28] sm:$0xff]  ;;  %v239_v57 = vld [vmem:[#allocation10 + $0x20] sm:$0xff] }
  0x28   :  { %201 = vmatpush.msra.mxu2 %v166_v18  ;;  %257 = vmatpush.msra.mxu0 %v248_v39  ;;  %v238_v58 = vld [vmem:[#allocation10 + $0x18] sm:$0xff]  ;;  %v237_v59 = vld [vmem:[#allocation10 + $0x10] sm:$0xff]  ;;  %v236_v60 = vld [vmem:[#allocation10 + $0x8] sm:$0xff] }
  0x29   :  { %220 = vmatpush.msra.mxu3 %v183_v19  ;;  %v235_v61 = vld [vmem:[#allocation10] sm:$0xff]  ;;  %v307_v62 = vld [vmem:[%s541_s4] ss:$0 sm:$0xff] }
  0x2a   :  { %202 = vmatpush.msra.mxu2 %v165_v20  ;;  %258 = vmatpush.msra.mxu0 %v247_v40  ;;  %v308_v4 = vld [vmem:[%s543_s6] ss:$0 sm:$0xff] }
  0x2b   :  { %221 = vmatpush.msra.mxu3 %v182_v21 }
  0x2c   :  { %203 = vmatpush.msra.mxu2 %v164_v22  ;;  %259 = vmatpush.msra.mxu0 %v246_v41 }
  0x2d   :  { %222 = vmatpush.msra.mxu3 %v181_v23 }
  0x2e   :  { %204 = vmatpush.msra.mxu2 %v163_v24  ;;  %260 = vmatpush.msra.mxu0 %v245_v42 }
  0x2f   :  { %223 = vmatpush.msra.mxu3 %v180_v28 }
  0x30   :  { %205 = vmatpush.msra.mxu2 %v162_v25  ;;  %261 = vmatpush.msra.mxu0 %v244_v43 }
  0x31   :  { %224 = vmatpush.msra.mxu3 %v179_v30 }
  0x32   :  { %206 = vmatpush.msra.mxu2 %v161_v26  ;;  %262 = vmatpush.msra.mxu0 %v243_v44 }
  0x33   :  { %225 = vmatpush.msra.mxu3 %v178_v32 }
  0x34   :  { %207 = vmatpush.msra.mxu2 %v160_v27  ;;  %263 = vmatpush.msra.mxu0 %v242_v46 }
  0x35   :  { %226 = vmatpush.msra.mxu3 %v177_v33 }
  0x36   :  { %208 = vmatpush.msra.mxu2 %v159_v29  ;;  %264 = vmatpush.msra.mxu0 %v241_v55 }
  0x37   :  { %227 = vmatpush.msra.mxu3 %v176_v34 }
  0x38   :  { %209 = vmatpush.msra.mxu2 %v158_v31  ;;  %265 = vmatpush.msra.mxu0 %v240_v56 }
  0x39   :  { %228 = vmatpush.msra.mxu3 %v175_v35 }
  0x3a   :  { %266 = vmatpush.msra.mxu0 %v239_v57 }
  0x3b   :  { %229 = vmatpush.msra.mxu3 %v174_v36 }
  0x3c   :  { %267 = vmatpush.msra.mxu0 %v238_v58 }
  0x3e   :  { %268 = vmatpush.msra.mxu0 %v237_v59 }
  0x40   :  { %269 = vmatpush.msra.mxu0 %v236_v60 }
  0x42   :  { %270 = vmatpush.msra.mxu0 %v235_v61 }
  0x98   :  { %v133_v48 = vpop.f32.mrf.mxu1 }
  0x99   :  { %v134_v49 = vadd.f32 %v133_v48, %v108_v47 }
  0x9b   :  { %v156_v50 = vmax.f32 %v134_v49, 0.0 }
  0x9d   :  { %210 = vmatmul.f32.vlgmr.msra.gmra.mxu2 %v156_v50 }
  0xa0   :  { %v153_v52 = vpop.f32.mrf.mxu1 }
  0xa1   :  { %v154_v53 = vadd.f32 %v153_v52, %v109_v51 }
  0xa3   :  { %v157_v54 = vmax.f32 %v154_v53, 0.0 }
  0xa5   :  { %230 = vmatmul.f32.vlgmr.msra.gmra.mxu3 %v157_v54 }
 0x120   :  { %v211_v63 = vpop.f32.mrf.mxu2 }
 0x121   :  { %v212_v0 = vadd.f32 %v307_v62, %v211_v63 }
 0x128   :  { %v231_v1 = vpop.f32.mrf.mxu3 }
 0x129   :  { %v232_v2 = vadd.f32 %v231_v1, %v212_v0 }
 0x12b   :  { %v234_v3 = vmax.f32 %v232_v2, 0.0 }
 0x12d   :  { %271 = vmatmul.f32.vlgmr.msra.gmra.mxu0 %v234_v3 }
 0x1aa   :  { %v272_v5 = vpop.f32.mrf.mxu0 }
 0x1ab   :  { %v273_v6 = vadd.f32 %v308_v4, %v272_v5 }
 0x1ad   :  { %275 = vst [vmem:[#allocation11] sm:$0xff] %v273_v6 }
 0x1ae   :  { %286 = dma.vmem_to_hbm [thread:$0]  %s282_s30, 128, %s284_s10, [#allocation4]  }
 0x1af   :  { %459 = dma.done.wait [#allocation4], 128  }
 0x1b0   :  { %460 = vsyncadd [#allocation4], 4294967168 }
 0x1b1   :  { %291 = vsyncpa [#allocation3], 1 }
 0x1b2   :  { %292 = vsyncpa [#allocation6], 1 }
 0x1b3   :  { %293 = vsyncpa [#allocation9], 1 }
 0x1b4   :  { %294 = vsyncpa [#allocation4], 1 }

// kernel: tpu_custom_call.1
= control target key start
LH: loop header
LB: loop body
LE: loop exit
PB: predicated region body
PF: predicated region fallthrough
CT: control target
= control target key end

     0   :  { %12 = vsyncpa [#allocation3], 0  ;;  %s537_s0 = inlined_call_operand.hbm [shape: f32[8,16], index: 0, kind: input, shape index: {}]   ;;  %s538_s1 = inlined_call_operand.hbm [shape: f32[16,256], index: 1, kind: input, shape index: {}]   ;;  %s539_s2 = inlined_call_operand.hbm [shape: f32[1,256], index: 2, kind: input, shape index: {}]   ;;  %s540_s3 = inlined_call_operand.hbm [shape: f32[256,128], index: 3, kind: input, shape index: {}]   ;;  %s541_s4 = inlined_call_operand.vmem [shape: f32[1,128], index: 4, kind: input, shape index: {}]   ;;  %s542_s5 = inlined_call_operand.hbm [shape: f32[128,128], index: 5, kind: input, shape index: {}]   ;;  %s543_s6 = inlined_call_operand.vmem [shape: f32[1,128], index: 6, kind: input, shape index: {}]   ;;  %s544_s7 = inlined_call_operand.hbm [shape: f32[8,128], index: 7, kind: output, shape index: {}]  }
   0x1   :  { %13 = vsyncpa [#allocation6], 0 }
   0x2   :  { %14 = vsyncpa [#allocation9], 0  ;;  %s31_s26 = sshll.u32 %s538_s1, 4  ;;  %s32_s26 = int_to_ptr.hbm [resolvable:$true] %s31_s26 }
   0x3   :  { %15 = vsyncpa [#allocation4], 0  ;;  %s461_s27 = smov [#allocation5]   ;;  %s55_s8 = sshll.u32 %s540_s3, 4  ;;  %s56_s8 = int_to_ptr.hbm [resolvable:$true] %s55_s8 }
   0x4   :  { %s33_s28 = sshll.u32 %s461_s27, 4  ;;  %s462_s9 = smov 256   ;;  %s34_s28 = int_to_ptr.vmem [resolvable:$true] %s33_s28 }
   0x5   :  { %s463_s10 = smov 16   ;;  %s464_s11 = smov [#allocation8]  }
   0x6   :  { %39 = dma.hbm_to_vmem [thread:$0]  %s32_s26, 512, %s34_s28, [#allocation6], %s462_s9, %s462_s9, %s463_s10  }
   0x7   :  { %s57_s12 = sshll.u32 %s464_s11, 4  ;;  %s465_s13 = smov 128   ;;  %s58_s12 = int_to_ptr.vmem [resolvable:$true] %s57_s12 }
   0x8   :  { %s466_s14 = smov 8   ;;  %s21_s16 = sshll.u32 %s537_s0, 4  ;;  %s22_s16 = int_to_ptr.hbm [resolvable:$true] %s21_s16 }
   0x9   :  { %63 = dma.hbm_to_vmem [thread:$0]  %s56_s8, 4096, %s58_s12, [#allocation9], %s465_s13, %s465_s13, %s466_s14  }
   0xa   :  { %s467_s17 = smov [#allocation2]   ;;  %s45_s20 = sshll.u32 %s539_s2, 4  ;;  %s46_s20 = int_to_ptr.hbm [resolvable:$true] %s45_s20 }
   0xb   :  { %s23_s18 = sshll.u32 %s467_s17, 4  ;;  %s468_s21 = smov [#allocation7]   ;;  %s24_s18 = int_to_ptr.vmem [resolvable:$true] %s23_s18 }
   0xc   :  { %26 = dma.hbm_to_vmem [thread:$0]  %s22_s16, 128, %s24_s18, [#allocation3]  }
   0xd   :  { %s47_s22 = sshll.u32 %s468_s21, 4  ;;  %s70_s25 = sshll.u32 %s542_s5, 4  ;;  %s48_s22 = int_to_ptr.vmem [resolvable:$true] %s47_s22  ;;  %s71_s25 = int_to_ptr.hbm [resolvable:$true] %s70_s25 }
   0xe   :  { %50 = dma.hbm_to_vmem [thread:$0]  %s46_s20, 32, %s48_s22, [#allocation6]  }
   0xf   :  { %s469_s0 = smov [#allocation10]  }
  0x10   :  { %s72_s26 = sshll.u32 %s469_s0, 4  ;;  %s73_s26 = int_to_ptr.vmem [resolvable:$true] %s72_s26 }
  0x11   :  { %78 = dma.hbm_to_vmem [thread:$0]  %s71_s25, 2048, %s73_s26, [#allocation9], %s465_s13, %s465_s13, %s466_s14  }
  0x12   :  { %453 = dma.done.wait [#allocation3], 128  }
  0x13   :  { %454 = vsyncadd [#allocation3], 4294967168 }
  0x14   :  { %455 = dma.done.wait [#allocation6], 544  }
  0x15   :  { %456 = vsyncadd [#allocation6], 4294966752 }
  0x16   :  { %457 = dma.done.wait [#allocation9], 6144  }
  0x17   :  { %458 = vsyncadd [#allocation9], 4294961152  ;;  %v104_v0 = vld [vmem:[#allocation5 + $0x10] sm:$0xff]  ;;  %v102_v1 = vld [vmem:[#allocation5] sm:$0xff]  ;;  %vm112_vm0 = vcmask 130048   ;;  %s470_s29 = smov [#allocation11]  }
  0x18   :  { %130 = vmatpush.msra.mxu1 %v104_v0  ;;  %v101_v2 = vld [vmem:[#allocation2] sm:$0xff]  ;;  %v171_v6 = vld [vmem:[#allocation8 + $0x68] sm:$0xff]  ;;  %v170_v10 = vld [vmem:[#allocation8 + $0x60] sm:$0xff]  ;;  %s281_s30 = sshll.u32 %s470_s29, 4  ;;  %s283_s10 = sshll.u32 %s544_s7, 4  ;;  %s282_s30 = int_to_ptr.vmem [resolvable:$true] %s281_s30  ;;  %s284_s10 = int_to_ptr.hbm [resolvable:$true] %s283_s10 }
  0x19   :  { %v173_v3 = vld [vmem:[#allocation8 + $0x78] sm:$0xff]  ;;  %v172_v5 = vld [vmem:[#allocation8 + $0x70] sm:$0xff]  ;;  %v103_v8 = vld [vmem:[#allocation5 + $0x8] sm:$0xff] }
  0x1a   :  { %v105_v4 = vld [vmem:[#allocation5 + $0x18] sm:$0xff]  ;;  %194 = vmatpush.msra.mxu2 %v173_v3  ;;  %131 = vmatpush.msra.mxu1 %v102_v1  ;;  %v187_v11 = vld [vmem:[#allocation8 + $0xe8] sm:$0xff]  ;;  %v186_v13 = vld [vmem:[#allocation8 + $0xe0] sm:$0xff] }
  0x1b   :  { %v189_v7 = vld [vmem:[#allocation8 + $0xf8] sm:$0xff]  ;;  %295 = vmatmul.msk.f32.vlgmr.msra.gmra.mxu1 %vm112_vm0, %v101_v2  ;;  %v188_v9 = vld [vmem:[#allocation8 + $0xf0] sm:$0xff]  ;;  %v167_v16 = vld [vmem:[#allocation8 + $0x48] sm:$0xff] }
  0x1c   :  { %195 = vmatpush.msra.mxu2 %v172_v5  ;;  %150 = vmatpush.msrb.mxu1 %v105_v4  ;;  %v169_v12 = vld [vmem:[#allocation8 + $0x58] sm:$0xff]  ;;  %v168_v14 = vld [vmem:[#allocation8 + $0x50] sm:$0xff]  ;;  %v166_v18 = vld [vmem:[#allocation8 + $0x40] sm:$0xff] }
  0x1d   :  { %214 = vmatpush.msra.mxu3 %v189_v7  ;;  %v185_v15 = vld [vmem:[#allocation8 + $0xd8] sm:$0xff]  ;;  %v184_v17 = vld [vmem:[#allocation8 + $0xd0] sm:$0xff]  ;;  %v183_v19 = vld [vmem:[#allocation8 + $0xc8] sm:$0xff] }
  0x1e   :  { %196 = vmatpush.msra.mxu2 %v171_v6  ;;  %151 = vmatpush.msrb.mxu1 %v103_v8  ;;  %v165_v20 = vld [vmem:[#allocation8 + $0x38] sm:$0xff]  ;;  %v182_v21 = vld [vmem:[#allocation8 + $0xc0] sm:$0xff]  ;;  %v164_v22 = vld [vmem:[#allocation8 + $0x30] sm:$0xff] }
  0x1f   :  { %215 = vmatpush.msra.mxu3 %v188_v9  ;;  %v181_v23 = vld [vmem:[#allocation8 + $0xb8] sm:$0xff]  ;;  %v163_v24 = vld [vmem:[#allocation8 + $0x28] sm:$0xff]  ;;  %v162_v25 = vld [vmem:[#allocation8 + $0x20] sm:$0xff] }
  0x20   :  { %197 = vmatpush.msra.mxu2 %v170_v10  ;;  %v161_v26 = vld [vmem:[#allocation8 + $0x18] sm:$0xff]  ;;  %v160_v27 = vld [vmem:[#allocation8 + $0x10] sm:$0xff]  ;;  %v159_v29 = vld [vmem:[#allocation8 + $0x8] sm:$0xff] }
  0x21   :  { %216 = vmatpush.msra.mxu3 %v187_v11  ;;  %v180_v28 = vld [vmem:[#allocation8 + $0xb0] sm:$0xff]  ;;  %v179_v30 = vld [vmem:[#allocation8 + $0xa8] sm:$0xff]  ;;  %v158_v31 = vld [vmem:[#allocation8] sm:$0xff] }
  0x22   :  { %198 = vmatpush.msra.mxu2 %v169_v12  ;;  %v178_v32 = vld [vmem:[#allocation8 + $0xa0] sm:$0xff]  ;;  %v177_v33 = vld [vmem:[#allocation8 + $0x98] sm:$0xff]  ;;  %v176_v34 = vld [vmem:[#allocation8 + $0x90] sm:$0xff] }
  0x23   :  { %217 = vmatpush.msra.mxu3 %v186_v13  ;;  %296 = vmatmul.msk.f32.vlgmr.msrb.gmra.mxu1 %vm112_vm0, %v101_v2  ;;  %v175_v35 = vld [vmem:[#allocation8 + $0x88] sm:$0xff]  ;;  %v174_v36 = vld [vmem:[#allocation8 + $0x80] sm:$0xff]  ;;  %v250_v37 = vld [vmem:[#allocation10 + $0x78] sm:$0xff] }
  0x24   :  { %199 = vmatpush.msra.mxu2 %v168_v14  ;;  %v249_v38 = vld [vmem:[#allocation10 + $0x70] sm:$0xff]  ;;  %255 = vmatpush.msra.mxu0 %v250_v37  ;;  %v248_v39 = vld [vmem:[#allocation10 + $0x68] sm:$0xff]  ;;  %v247_v40 = vld [vmem:[#allocation10 + $0x60] sm:$0xff] }
  0x25   :  { %218 = vmatpush.msra.mxu3 %v185_v15  ;;  %v246_v41 = vld [vmem:[#allocation10 + $0x58] sm:$0xff]  ;;  %v245_v42 = vld [vmem:[#allocation10 + $0x50] sm:$0xff]  ;;  %v244_v43 = vld [vmem:[#allocation10 + $0x48] sm:$0xff] }
  0x26   :  { %200 = vmatpush.msra.mxu2 %v167_v16  ;;  %256 = vmatpush.msra.mxu0 %v249_v38  ;;  %v243_v44 = vld [vmem:[#allocation10 + $0x40] sm:$0xff]  ;;  %v106_v45 = vld [vmem:[#allocation7] sm:$0x3]  ;;  %v241_v55 = vld [vmem:[#allocation10 + $0x30] sm:$0xff] }
  0x27   :  { %219 = vmatpush.msra.mxu3 %v184_v17  ;;  %v242_v46 = vld [vmem:[#allocation10 + $0x38] sm:$0xff]  ;;  %v108_v47 = vperm.slane %v106_v45, 0  ;;  %v109_v51 = vperm.slane %v106_v45, 1  ;;  %v240_v56 = vld [vmem:[#allocation10 + $0x28] sm:$0xff]  ;;  %v239_v57 = vld [vmem:[#allocation10 + $0x20] sm:$0xff] }
  0x28   :  { %201 = vmatpush.msra.mxu2 %v166_v18  ;;  %257 = vmatpush.msra.mxu0 %v248_v39  ;;  %v238_v58 = vld [vmem:[#allocation10 + $0x18] sm:$0xff]  ;;  %v237_v59 = vld [vmem:[#allocation10 + $0x10] sm:$0xff]  ;;  %v236_v60 = vld [vmem:[#allocation10 + $0x8] sm:$0xff] }
  0x29   :  { %220 = vmatpush.msra.mxu3 %v183_v19  ;;  %v235_v61 = vld [vmem:[#allocation10] sm:$0xff]  ;;  %v307_v62 = vld [vmem:[%s541_s4] ss:$0 sm:$0xff] }
  0x2a   :  { %202 = vmatpush.msra.mxu2 %v165_v20  ;;  %258 = vmatpush.msra.mxu0 %v247_v40  ;;  %v308_v4 = vld [vmem:[%s543_s6] ss:$0 sm:$0xff] }
  0x2b   :  { %221 = vmatpush.msra.mxu3 %v182_v21 }
  0x2c   :  { %203 = vmatpush.msra.mxu2 %v164_v22  ;;  %259 = vmatpush.msra.mxu0 %v246_v41 }
  0x2d   :  { %222 = vmatpush.msra.mxu3 %v181_v23 }
  0x2e   :  { %204 = vmatpush.msra.mxu2 %v163_v24  ;;  %260 = vmatpush.msra.mxu0 %v245_v42 }
  0x2f   :  { %223 = vmatpush.msra.mxu3 %v180_v28 }
  0x30   :  { %205 = vmatpush.msra.mxu2 %v162_v25  ;;  %261 = vmatpush.msra.mxu0 %v244_v43 }
  0x31   :  { %224 = vmatpush.msra.mxu3 %v179_v30 }
  0x32   :  { %206 = vmatpush.msra.mxu2 %v161_v26  ;;  %262 = vmatpush.msra.mxu0 %v243_v44 }
  0x33   :  { %225 = vmatpush.msra.mxu3 %v178_v32 }
  0x34   :  { %207 = vmatpush.msra.mxu2 %v160_v27  ;;  %263 = vmatpush.msra.mxu0 %v242_v46 }
  0x35   :  { %226 = vmatpush.msra.mxu3 %v177_v33 }
  0x36   :  { %208 = vmatpush.msra.mxu2 %v159_v29  ;;  %264 = vmatpush.msra.mxu0 %v241_v55 }
  0x37   :  { %227 = vmatpush.msra.mxu3 %v176_v34 }
  0x38   :  { %209 = vmatpush.msra.mxu2 %v158_v31  ;;  %265 = vmatpush.msra.mxu0 %v240_v56 }
  0x39   :  { %228 = vmatpush.msra.mxu3 %v175_v35 }
  0x3a   :  { %266 = vmatpush.msra.mxu0 %v239_v57 }
  0x3b   :  { %229 = vmatpush.msra.mxu3 %v174_v36 }
  0x3c   :  { %267 = vmatpush.msra.mxu0 %v238_v58 }
  0x3e   :  { %268 = vmatpush.msra.mxu0 %v237_v59 }
  0x40   :  { %269 = vmatpush.msra.mxu0 %v236_v60 }
  0x42   :  { %270 = vmatpush.msra.mxu0 %v235_v61 }
  0x98   :  { %v133_v48 = vpop.f32.mrf.mxu1 }
  0x99   :  { %v134_v49 = vadd.f32 %v133_v48, %v108_v47 }
  0x9b   :  { %v156_v50 = vmax.f32 %v134_v49, 0.0 }
  0x9d   :  { %210 = vmatmul.f32.vlgmr.msra.gmra.mxu2 %v156_v50 }
  0xa0   :  { %v153_v52 = vpop.f32.mrf.mxu1 }
  0xa1   :  { %v154_v53 = vadd.f32 %v153_v52, %v109_v51 }
  0xa3   :  { %v157_v54 = vmax.f32 %v154_v53, 0.0 }
  0xa5   :  { %230 = vmatmul.f32.vlgmr.msra.gmra.mxu3 %v157_v54 }
 0x120   :  { %v211_v63 = vpop.f32.mrf.mxu2 }
 0x121   :  { %v212_v0 = vadd.f32 %v307_v62, %v211_v63 }
 0x128   :  { %v231_v1 = vpop.f32.mrf.mxu3 }
 0x129   :  { %v232_v2 = vadd.f32 %v231_v1, %v212_v0 }
 0x12b   :  { %v234_v3 = vmax.f32 %v232_v2, 0.0 }
 0x12d   :  { %271 = vmatmul.f32.vlgmr.msra.gmra.mxu0 %v234_v3 }
 0x1aa   :  { %v272_v5 = vpop.f32.mrf.mxu0 }
 0x1ab   :  { %v273_v6 = vadd.f32 %v308_v4, %v272_v5 }
 0x1ad   :  { %275 = vst [vmem:[#allocation11] sm:$0xff] %v273_v6 }
 0x1ae   :  { %286 = dma.vmem_to_hbm [thread:$0]  %s282_s30, 128, %s284_s10, [#allocation4]  }
 0x1af   :  { %459 = dma.done.wait [#allocation4], 128  }
 0x1b0   :  { %460 = vsyncadd [#allocation4], 4294967168 }
 0x1b1   :  { %291 = vsyncpa [#allocation3], 1 }
 0x1b2   :  { %292 = vsyncpa [#allocation6], 1 }
 0x1b3   :  { %293 = vsyncpa [#allocation9], 1 }
 0x1b4   :  { %294 = vsyncpa [#allocation4], 1 }

</bundles_post_ra>
